<compile_context>
chip_gen: v7x
topology: tpu7x:2x2x1
jax: 0.10.0
libtpu: 0.0.40
codegen_flags: <defaults>
</compile_context>

<pallas_src>
import functools
import math

import jax
import jax.numpy as jnp
from jax import lax
from jax.experimental import pallas as pl
from jax.experimental.pallas import tpu as pltpu


def mha_fused_kernel(q_ref, k_ref, v_ref,
                     wq_ref, wk_ref, wv_ref, wo_ref,
                     bq_ref, bk_ref, bv_ref, bo_ref,
                     o_ref, *, num_heads, d_k, batch_block):
    f32 = jnp.float32
    scale = 1.0 / math.sqrt(d_k)

    # Weights / biases: same block every grid step -> DMA'd once, reused here.
    wq = wq_ref[...]                 # (D, H*d_k), fused head-wise, mxu_dtype
    wk = wk_ref[...]
    wv = wv_ref[...]
    bq = bq_ref[...].astype(f32)     # (1, H*d_k)
    bk = bk_ref[...].astype(f32)
    bv = bv_ref[...].astype(f32)
    bo = bo_ref[...].astype(f32)     # (1, D), pre-summed over heads
    mxu_dtype = wq.dtype

    M = q_ref.shape[1]
    D = q_ref.shape[2]

    for b in range(batch_block):     # static unroll: fold batches per grid step (v5e/v6e)
        q = q_ref[b]                 # (M, D) in mxu_dtype
        k = k_ref[b]                 # (N, D)
        v = v_ref[b]                 # (N, D)

        # Fused wide projections: one lane-dense (·,D)x(D,H*d_k) matmul per input,
        # f32 accumulation, bias add in f32.
        qp = jnp.dot(q, wq, preferred_element_type=f32) + bq     # (M, H*d_k)
        kp = jnp.dot(k, wk, preferred_element_type=f32) + bk     # (N, H*d_k)
        vp = jnp.dot(v, wv, preferred_element_type=f32) + bv     # (N, H*d_k)

        out = jnp.zeros((M, D), f32) + bo                        # (M, D), bias once

        for h in range(num_heads):   # static unroll over heads
            lo = h * d_k
            # Static per-head lane slices: each head contracts only its own d_k
            # columns (no H-times-redundant MXU work, no mask multiplies).
            qh = qp[:, lo:lo + d_k]
            kh = kp[:, lo:lo + d_k]
            vh = vp[:, lo:lo + d_k]

            # Scores: contract the last axis of both operands (no materialized kh.T).
            s = lax.dot_general(qh.astype(mxu_dtype), kh.astype(mxu_dtype),
                                (((1,), (1,)), ((), ())),
                                preferred_element_type=f32) * scale       # (M, N)

            # Numerically-stable softmax, exact divide (fixes the approx-recip error).
            s = s - jnp.max(s, axis=-1, keepdims=True)
            p = jnp.exp(s)
            p = p / jnp.sum(p, axis=-1, keepdims=True)

            a = jnp.dot(p.astype(mxu_dtype), vh.astype(mxu_dtype),
                        preferred_element_type=f32)                       # (M, d_k)

            # Per-head output projection, accumulated in f32 into the (M, D) tile.
            out = out + jnp.dot(a.astype(mxu_dtype), wo_ref[h],
                                preferred_element_type=f32)               # (M, D)

        o_ref[b] = out.astype(o_ref.dtype)


def multi_head_attention_simple(q, k, v, wq, wk, wv, wo, bq, bk, bv, bo,
                                *, mxu_dtype=jnp.float32, batch_block=1):
    """q:(B,M,D) k,v:(B,N,D); wq/wk/wv:(H,D,d_k) wo:(H,d_k,D); b*: (H,1,d_k)/(H,1,D)."""
    B, M, D = q.shape
    _, N, _ = k.shape
    H, D2, d_k = wq.shape
    assert D2 == D
    HK = H * d_k
    assert B % batch_block == 0, "batch_block must divide batch size"

    # Host-side weight fusion (pure layout; constant-folded / fused under jit).
    # Column h*d_k + i of the fused weight == wq[h, :, i].
    wq_cat = jnp.transpose(wq, (1, 0, 2)).reshape(D, HK).astype(mxu_dtype)
    wk_cat = jnp.transpose(wk, (1, 0, 2)).reshape(D, HK).astype(mxu_dtype)
    wv_cat = jnp.transpose(wv, (1, 0, 2)).reshape(D, HK).astype(mxu_dtype)
    wo_h = wo.astype(mxu_dtype)                      # (H, d_k, D), natural per-head layout
    bq_cat = bq.reshape(1, HK)
    bk_cat = bk.reshape(1, HK)
    bv_cat = bv.reshape(1, HK)
    bo_sum = jnp.sum(bo, axis=0).reshape(1, D)       # sum_h bo[h]

    qc = q.astype(mxu_dtype)
    kc = k.astype(mxu_dtype)
    vc = v.astype(mxu_dtype)

    kernel = functools.partial(mha_fused_kernel, num_heads=H, d_k=d_k,
                               batch_block=batch_block)

    def bcast(shape):
        # Same block every grid step -> fetched once, no per-step re-DMA.
        return pl.BlockSpec(shape, lambda b: (0,) * len(shape))

    grid = (B // batch_block,)
    return pl.pallas_call(
        kernel,
        out_shape=jax.ShapeDtypeStruct((B, M, D), jnp.float32),
        grid_spec=pltpu.PrefetchScalarGridSpec(
            num_scalar_prefetch=0,
            grid=grid,
            in_specs=[
                pl.BlockSpec((batch_block, M, D), lambda b: (b, 0, 0)),  # q
                pl.BlockSpec((batch_block, N, D), lambda b: (b, 0, 0)),  # k
                pl.BlockSpec((batch_block, N, D), lambda b: (b, 0, 0)),  # v
                bcast((D, HK)),       # Wq (fused)
                bcast((D, HK)),       # Wk (fused)
                bcast((D, HK)),       # Wv (fused)
                bcast((H, d_k, D)),   # Wo (per-head)
                bcast((1, HK)),       # bq (fused)
                bcast((1, HK)),       # bk (fused)
                bcast((1, HK)),       # bv (fused)
                bcast((1, D)),        # bo (summed over heads)
            ],
            out_specs=pl.BlockSpec((batch_block, M, D), lambda b: (b, 0, 0)),
        ),
        compiler_params=pltpu.CompilerParams(
            dimension_semantics=("parallel",)),
    )(qc, kc, vc, wq_cat, wk_cat, wv_cat, wo_h,
      bq_cat, bk_cat, bv_cat, bo_sum)


def reference(q, k, v, wq, wk, wv, wo, bq, bk, bv, bo):
    """Pure-JAX reference matching the PyTorch module semantics."""
    H, D, d_k = wq.shape
    out = jnp.zeros(q.shape, jnp.float32)
    for h in range(H):
        qp = q @ wq[h] + bq[h]
        kp = k @ wk[h] + bk[h]
        vp = v @ wv[h] + bv[h]
        s = (qp @ jnp.swapaxes(kp, -1, -2)) / math.sqrt(d_k)
        p = jax.nn.softmax(s, axis=-1)
        a = p @ vp
        out = out + (a @ wo[h] + bo[h])
    return out


if __name__ == "__main__":
    # config: d_model=32, heads_num=4 -> d_k=8, attention_bias=True
    B, M, N, D, H = 2, 8, 8, 32, 4
    d_k = D // H

    key = jax.random.PRNGKey(0)
    kq, kk, kv, kwq, kwk, kwv, kwo, kb = jax.random.split(key, 8)

    q = jax.random.normal(kq, (B, M, D), jnp.float32)
    k = jax.random.normal(kk, (B, N, D), jnp.float32)
    v = jax.random.normal(kv, (B, N, D), jnp.float32)

    # Xavier-uniform bounds (fan_in=d_model, fan_out=d_k and vice versa for Wo)
    a_in = math.sqrt(6.0 / (D + d_k))
    wq = jax.random.uniform(kwq, (H, D, d_k), jnp.float32, -a_in, a_in)
    wk = jax.random.uniform(kwk, (H, D, d_k), jnp.float32, -a_in, a_in)
    wv = jax.random.uniform(kwv, (H, D, d_k), jnp.float32, -a_in, a_in)
    wo = jax.random.uniform(kwo, (H, d_k, D), jnp.float32, -a_in, a_in)

    kb1, kb2, kb3, kb4 = jax.random.split(kb, 4)
    bq = 1e-6 * jax.random.normal(kb1, (H, 1, d_k), jnp.float32)
    bk = 1e-6 * jax.random.normal(kb2, (H, 1, d_k), jnp.float32)
    bv = 1e-6 * jax.random.normal(kb3, (H, 1, d_k), jnp.float32)
    bo = 1e-6 * jax.random.normal(kb4, (H, 1, D), jnp.float32)

    ref = reference(q, k, v, wq, wk, wv, wo, bq, bk, bv, bo)

    # v7x-style call: one batch per grid step, "parallel" grid -> both TensorCores busy.
    mha = jax.jit(functools.partial(multi_head_attention_simple, batch_block=1))
    out = jax.block_until_ready(mha(q, k, v, wq, wk, wv, wo, bq, bk, bv, bo))
    assert out.shape == (B, M, D)
    assert jnp.allclose(out, ref, atol=1e-4, rtol=1e-4), float(jnp.max(jnp.abs(out - ref)))

    # v5e/v6e-style call: fold both batch elements into one grid step (amortizes the
    # serial per-grid-step overhead on single-TC chips).
    mha_folded = jax.jit(functools.partial(multi_head_attention_simple, batch_block=2))
    out2 = jax.block_until_ready(mha_folded(q, k, v, wq, wk, wv, wo, bq, bk, bv, bo))
    assert jnp.allclose(out2, ref, atol=1e-4, rtol=1e-4), float(jnp.max(jnp.abs(out2 - ref)))

    print("KERNEL_OK")
</pallas_src>

<mosaic_0001>
module attributes {stable_mosaic.version = 11 : i64} {
  func.func @mha_fused_kernel(%arg0: i32, %arg1: memref<1x8x32xf32, #tpu.memory_space<vmem>>, %arg2: memref<1x8x32xf32, #tpu.memory_space<vmem>>, %arg3: memref<1x8x32xf32, #tpu.memory_space<vmem>>, %arg4: memref<32x32xf32, #tpu.memory_space<vmem>>, %arg5: memref<32x32xf32, #tpu.memory_space<vmem>>, %arg6: memref<32x32xf32, #tpu.memory_space<vmem>>, %arg7: memref<4x8x32xf32, #tpu.memory_space<vmem>>, %arg8: memref<1x32xf32, #tpu.memory_space<vmem>>, %arg9: memref<1x32xf32, #tpu.memory_space<vmem>>, %arg10: memref<1x32xf32, #tpu.memory_space<vmem>>, %arg11: memref<1x32xf32, #tpu.memory_space<vmem>>, %arg12: memref<1x8x32xf32, #tpu.memory_space<vmem>>) attributes {dimension_semantics = [#tpu.dimension_semantics<parallel>], iteration_bounds = array<i64: 2>, scalar_prefetch = 0 : i64, scratch_operands = 0 : i64, tpu.core_type = #tpu.core_type<tc>, window_params = [{transform_indices = @transform_0, window_bounds = array<i64: 1, 8, 32>}, {transform_indices = @transform_1, window_bounds = array<i64: 1, 8, 32>}, {transform_indices = @transform_2, window_bounds = array<i64: 1, 8, 32>}, {pipeline_mode = #tpu.pipeline_mode<synchronous>, transform_indices = @transform_3, window_bounds = array<i64: 32, 32>}, {pipeline_mode = #tpu.pipeline_mode<synchronous>, transform_indices = @transform_4, window_bounds = array<i64: 32, 32>}, {pipeline_mode = #tpu.pipeline_mode<synchronous>, transform_indices = @transform_5, window_bounds = array<i64: 32, 32>}, {pipeline_mode = #tpu.pipeline_mode<synchronous>, transform_indices = @transform_6, window_bounds = array<i64: 4, 8, 32>}, {pipeline_mode = #tpu.pipeline_mode<synchronous>, transform_indices = @transform_7, window_bounds = array<i64: 1, 32>}, {pipeline_mode = #tpu.pipeline_mode<synchronous>, transform_indices = @transform_8, window_bounds = array<i64: 1, 32>}, {pipeline_mode = #tpu.pipeline_mode<synchronous>, transform_indices = @transform_9, window_bounds = array<i64: 1, 32>}, {pipeline_mode = #tpu.pipeline_mode<synchronous>, transform_indices = @transform_10, window_bounds = array<i64: 1, 32>}, {transform_indices = @transform_11, window_bounds = array<i64: 1, 8, 32>}]} {
    %c0 = arith.constant 0 : index
    %c0_0 = arith.constant 0 : index
    %0 = vector.load %arg4[%c0, %c0_0] : memref<32x32xf32, #tpu.memory_space<vmem>>, vector<32x32xf32>
    %c0_1 = arith.constant 0 : index
    %c0_2 = arith.constant 0 : index
    %1 = vector.load %arg5[%c0_1, %c0_2] : memref<32x32xf32, #tpu.memory_space<vmem>>, vector<32x32xf32>
    %c0_3 = arith.constant 0 : index
    %c0_4 = arith.constant 0 : index
    %2 = vector.load %arg6[%c0_3, %c0_4] : memref<32x32xf32, #tpu.memory_space<vmem>>, vector<32x32xf32>
    %c0_5 = arith.constant 0 : index
    %c0_6 = arith.constant 0 : index
    %3 = vector.load %arg8[%c0_5, %c0_6] : memref<1x32xf32, #tpu.memory_space<vmem>>, vector<1x32xf32>
    %c0_7 = arith.constant 0 : index
    %c0_8 = arith.constant 0 : index
    %4 = vector.load %arg9[%c0_7, %c0_8] : memref<1x32xf32, #tpu.memory_space<vmem>>, vector<1x32xf32>
    %c0_9 = arith.constant 0 : index
    %c0_10 = arith.constant 0 : index
    %5 = vector.load %arg10[%c0_9, %c0_10] : memref<1x32xf32, #tpu.memory_space<vmem>>, vector<1x32xf32>
    %c0_11 = arith.constant 0 : index
    %c0_12 = arith.constant 0 : index
    %6 = vector.load %arg11[%c0_11, %c0_12] : memref<1x32xf32, #tpu.memory_space<vmem>>, vector<1x32xf32>
    %c0_13 = arith.constant 0 : index
    %c0_14 = arith.constant 0 : index
    %c0_15 = arith.constant 0 : index
    %7 = vector.load %arg1[%c0_13, %c0_14, %c0_15] : memref<1x8x32xf32, #tpu.memory_space<vmem>>, vector<1x8x32xf32>
    %8 = vector.shape_cast %7 : vector<1x8x32xf32> to vector<8x32xf32>
    %c0_16 = arith.constant 0 : index
    %c0_17 = arith.constant 0 : index
    %c0_18 = arith.constant 0 : index
    %9 = vector.load %arg2[%c0_16, %c0_17, %c0_18] : memref<1x8x32xf32, #tpu.memory_space<vmem>>, vector<1x8x32xf32>
    %10 = vector.shape_cast %9 : vector<1x8x32xf32> to vector<8x32xf32>
    %c0_19 = arith.constant 0 : index
    %c0_20 = arith.constant 0 : index
    %c0_21 = arith.constant 0 : index
    %11 = vector.load %arg3[%c0_19, %c0_20, %c0_21] : memref<1x8x32xf32, #tpu.memory_space<vmem>>, vector<1x8x32xf32>
    %12 = vector.shape_cast %11 : vector<1x8x32xf32> to vector<8x32xf32>
    %cst = arith.constant dense<0.000000e+00> : vector<8x32xf32>
    %13 = tpu.matmul %8, %0, %cst {dimension_numbers = #tpu.dot_dimension_numbers<[1], [0], [0], [1], [0, 0, 1, 1], [], []>} : vector<8x32xf32>, vector<32x32xf32>, vector<8x32xf32> -> vector<8x32xf32>
    %14 = vector.broadcast %3 : vector<1x32xf32> to vector<8x32xf32>
    %15 = arith.addf %13, %14 : vector<8x32xf32>
    %cst_22 = arith.constant dense<0.000000e+00> : vector<8x32xf32>
    %16 = tpu.matmul %10, %1, %cst_22 {dimension_numbers = #tpu.dot_dimension_numbers<[1], [0], [0], [1], [0, 0, 1, 1], [], []>} : vector<8x32xf32>, vector<32x32xf32>, vector<8x32xf32> -> vector<8x32xf32>
    %17 = vector.broadcast %4 : vector<1x32xf32> to vector<8x32xf32>
    %18 = arith.addf %16, %17 : vector<8x32xf32>
    %cst_23 = arith.constant dense<0.000000e+00> : vector<8x32xf32>
    %19 = tpu.matmul %12, %2, %cst_23 {dimension_numbers = #tpu.dot_dimension_numbers<[1], [0], [0], [1], [0, 0, 1, 1], [], []>} : vector<8x32xf32>, vector<32x32xf32>, vector<8x32xf32> -> vector<8x32xf32>
    %20 = vector.broadcast %5 : vector<1x32xf32> to vector<8x32xf32>
    %21 = arith.addf %19, %20 : vector<8x32xf32>
    %cst_24 = arith.constant 0.000000e+00 : f32
    %22 = vector.broadcast %cst_24 : f32 to vector<8x32xf32>
    %23 = vector.broadcast %6 : vector<1x32xf32> to vector<8x32xf32>
    %24 = arith.addf %22, %23 : vector<8x32xf32>
    %25 = vector.extract_strided_slice %15 {offsets = [0, 0], sizes = [8, 8], strides = [1, 1]} : vector<8x32xf32> to vector<8x8xf32>
    %26 = vector.extract_strided_slice %18 {offsets = [0, 0], sizes = [8, 8], strides = [1, 1]} : vector<8x32xf32> to vector<8x8xf32>
    %27 = vector.extract_strided_slice %21 {offsets = [0, 0], sizes = [8, 8], strides = [1, 1]} : vector<8x32xf32> to vector<8x8xf32>
    %cst_25 = arith.constant dense<0.000000e+00> : vector<8x8xf32>
    %28 = tpu.matmul %25, %26, %cst_25 {dimension_numbers = #tpu.dot_dimension_numbers<[1], [1], [0], [0], [0, 0, 1, 0], [], []>} : vector<8x8xf32>, vector<8x8xf32>, vector<8x8xf32> -> vector<8x8xf32>
    %cst_26 = arith.constant 0.353553385 : f32
    %29 = vector.broadcast %cst_26 : f32 to vector<8x8xf32>
    %30 = arith.mulf %28, %29 : vector<8x8xf32>
    %cst_27 = arith.constant dense<0xFF800000> : vector<8xf32>
    %31 = vector.multi_reduction <maximumf>, %30, %cst_27 [1] : vector<8x8xf32> to vector<8xf32>
    %32 = vector.shape_cast %31 : vector<8xf32> to vector<8x1xf32>
    %33 = vector.broadcast %32 : vector<8x1xf32> to vector<8x8xf32>
    %34 = arith.subf %30, %33 : vector<8x8xf32>
    %35 = math.exp %34 : vector<8x8xf32>
    %cst_28 = arith.constant dense<0.000000e+00> : vector<8xf32>
    %36 = vector.multi_reduction <add>, %35, %cst_28 [1] : vector<8x8xf32> to vector<8xf32>
    %37 = vector.shape_cast %36 : vector<8xf32> to vector<8x1xf32>
    %38 = vector.broadcast %37 : vector<8x1xf32> to vector<8x8xf32>
    %39 = arith.divf %35, %38 : vector<8x8xf32>
    %cst_29 = arith.constant dense<0.000000e+00> : vector<8x8xf32>
    %40 = tpu.matmul %39, %27, %cst_29 {dimension_numbers = #tpu.dot_dimension_numbers<[1], [0], [0], [1], [0, 0, 1, 1], [], []>} : vector<8x8xf32>, vector<8x8xf32>, vector<8x8xf32> -> vector<8x8xf32>
    %c0_30 = arith.constant 0 : index
    %c0_31 = arith.constant 0 : index
    %c0_32 = arith.constant 0 : index
    %41 = vector.load %arg7[%c0_30, %c0_31, %c0_32] : memref<4x8x32xf32, #tpu.memory_space<vmem>>, vector<1x8x32xf32>
    %42 = vector.shape_cast %41 : vector<1x8x32xf32> to vector<8x32xf32>
    %cst_33 = arith.constant dense<0.000000e+00> : vector<8x32xf32>
    %43 = tpu.matmul %40, %42, %cst_33 {dimension_numbers = #tpu.dot_dimension_numbers<[1], [0], [0], [1], [0, 0, 1, 1], [], []>} : vector<8x8xf32>, vector<8x32xf32>, vector<8x32xf32> -> vector<8x32xf32>
    %44 = arith.addf %24, %43 : vector<8x32xf32>
    %45 = vector.extract_strided_slice %15 {offsets = [0, 8], sizes = [8, 8], strides = [1, 1]} : vector<8x32xf32> to vector<8x8xf32>
    %46 = vector.extract_strided_slice %18 {offsets = [0, 8], sizes = [8, 8], strides = [1, 1]} : vector<8x32xf32> to vector<8x8xf32>
    %47 = vector.extract_strided_slice %21 {offsets = [0, 8], sizes = [8, 8], strides = [1, 1]} : vector<8x32xf32> to vector<8x8xf32>
    %cst_34 = arith.constant dense<0.000000e+00> : vector<8x8xf32>
    %48 = tpu.matmul %45, %46, %cst_34 {dimension_numbers = #tpu.dot_dimension_numbers<[1], [1], [0], [0], [0, 0, 1, 0], [], []>} : vector<8x8xf32>, vector<8x8xf32>, vector<8x8xf32> -> vector<8x8xf32>
    %cst_35 = arith.constant 0.353553385 : f32
    %49 = vector.broadcast %cst_35 : f32 to vector<8x8xf32>
    %50 = arith.mulf %48, %49 : vector<8x8xf32>
    %cst_36 = arith.constant dense<0xFF800000> : vector<8xf32>
    %51 = vector.multi_reduction <maximumf>, %50, %cst_36 [1] : vector<8x8xf32> to vector<8xf32>
    %52 = vector.shape_cast %51 : vector<8xf32> to vector<8x1xf32>
    %53 = vector.broadcast %52 : vector<8x1xf32> to vector<8x8xf32>
    %54 = arith.subf %50, %53 : vector<8x8xf32>
    %55 = math.exp %54 : vector<8x8xf32>
    %cst_37 = arith.constant dense<0.000000e+00> : vector<8xf32>
    %56 = vector.multi_reduction <add>, %55, %cst_37 [1] : vector<8x8xf32> to vector<8xf32>
    %57 = vector.shape_cast %56 : vector<8xf32> to vector<8x1xf32>
    %58 = vector.broadcast %57 : vector<8x1xf32> to vector<8x8xf32>
    %59 = arith.divf %55, %58 : vector<8x8xf32>
    %cst_38 = arith.constant dense<0.000000e+00> : vector<8x8xf32>
    %60 = tpu.matmul %59, %47, %cst_38 {dimension_numbers = #tpu.dot_dimension_numbers<[1], [0], [0], [1], [0, 0, 1, 1], [], []>} : vector<8x8xf32>, vector<8x8xf32>, vector<8x8xf32> -> vector<8x8xf32>
    %c1 = arith.constant 1 : index
    %c0_39 = arith.constant 0 : index
    %c0_40 = arith.constant 0 : index
    %61 = vector.load %arg7[%c1, %c0_39, %c0_40] : memref<4x8x32xf32, #tpu.memory_space<vmem>>, vector<1x8x32xf32>
    %62 = vector.shape_cast %61 : vector<1x8x32xf32> to vector<8x32xf32>
    %cst_41 = arith.constant dense<0.000000e+00> : vector<8x32xf32>
    %63 = tpu.matmul %60, %62, %cst_41 {dimension_numbers = #tpu.dot_dimension_numbers<[1], [0], [0], [1], [0, 0, 1, 1], [], []>} : vector<8x8xf32>, vector<8x32xf32>, vector<8x32xf32> -> vector<8x32xf32>
    %64 = arith.addf %44, %63 : vector<8x32xf32>
    %65 = vector.extract_strided_slice %15 {offsets = [0, 16], sizes = [8, 8], strides = [1, 1]} : vector<8x32xf32> to vector<8x8xf32>
    %66 = vector.extract_strided_slice %18 {offsets = [0, 16], sizes = [8, 8], strides = [1, 1]} : vector<8x32xf32> to vector<8x8xf32>
    %67 = vector.extract_strided_slice %21 {offsets = [0, 16], sizes = [8, 8], strides = [1, 1]} : vector<8x32xf32> to vector<8x8xf32>
    %cst_42 = arith.constant dense<0.000000e+00> : vector<8x8xf32>
    %68 = tpu.matmul %65, %66, %cst_42 {dimension_numbers = #tpu.dot_dimension_numbers<[1], [1], [0], [0], [0, 0, 1, 0], [], []>} : vector<8x8xf32>, vector<8x8xf32>, vector<8x8xf32> -> vector<8x8xf32>
    %cst_43 = arith.constant 0.353553385 : f32
    %69 = vector.broadcast %cst_43 : f32 to vector<8x8xf32>
    %70 = arith.mulf %68, %69 : vector<8x8xf32>
    %cst_44 = arith.constant dense<0xFF800000> : vector<8xf32>
    %71 = vector.multi_reduction <maximumf>, %70, %cst_44 [1] : vector<8x8xf32> to vector<8xf32>
    %72 = vector.shape_cast %71 : vector<8xf32> to vector<8x1xf32>
    %73 = vector.broadcast %72 : vector<8x1xf32> to vector<8x8xf32>
    %74 = arith.subf %70, %73 : vector<8x8xf32>
    %75 = math.exp %74 : vector<8x8xf32>
    %cst_45 = arith.constant dense<0.000000e+00> : vector<8xf32>
    %76 = vector.multi_reduction <add>, %75, %cst_45 [1] : vector<8x8xf32> to vector<8xf32>
    %77 = vector.shape_cast %76 : vector<8xf32> to vector<8x1xf32>
    %78 = vector.broadcast %77 : vector<8x1xf32> to vector<8x8xf32>
    %79 = arith.divf %75, %78 : vector<8x8xf32>
    %cst_46 = arith.constant dense<0.000000e+00> : vector<8x8xf32>
    %80 = tpu.matmul %79, %67, %cst_46 {dimension_numbers = #tpu.dot_dimension_numbers<[1], [0], [0], [1], [0, 0, 1, 1], [], []>} : vector<8x8xf32>, vector<8x8xf32>, vector<8x8xf32> -> vector<8x8xf32>
    %c2 = arith.constant 2 : index
    %c0_47 = arith.constant 0 : index
    %c0_48 = arith.constant 0 : index
    %81 = vector.load %arg7[%c2, %c0_47, %c0_48] : memref<4x8x32xf32, #tpu.memory_space<vmem>>, vector<1x8x32xf32>
    %82 = vector.shape_cast %81 : vector<1x8x32xf32> to vector<8x32xf32>
    %cst_49 = arith.constant dense<0.000000e+00> : vector<8x32xf32>
    %83 = tpu.matmul %80, %82, %cst_49 {dimension_numbers = #tpu.dot_dimension_numbers<[1], [0], [0], [1], [0, 0, 1, 1], [], []>} : vector<8x8xf32>, vector<8x32xf32>, vector<8x32xf32> -> vector<8x32xf32>
    %84 = arith.addf %64, %83 : vector<8x32xf32>
    %85 = vector.extract_strided_slice %15 {offsets = [0, 24], sizes = [8, 8], strides = [1, 1]} : vector<8x32xf32> to vector<8x8xf32>
    %86 = vector.extract_strided_slice %18 {offsets = [0, 24], sizes = [8, 8], strides = [1, 1]} : vector<8x32xf32> to vector<8x8xf32>
    %87 = vector.extract_strided_slice %21 {offsets = [0, 24], sizes = [8, 8], strides = [1, 1]} : vector<8x32xf32> to vector<8x8xf32>
    %cst_50 = arith.constant dense<0.000000e+00> : vector<8x8xf32>
    %88 = tpu.matmul %85, %86, %cst_50 {dimension_numbers = #tpu.dot_dimension_numbers<[1], [1], [0], [0], [0, 0, 1, 0], [], []>} : vector<8x8xf32>, vector<8x8xf32>, vector<8x8xf32> -> vector<8x8xf32>
    %cst_51 = arith.constant 0.353553385 : f32
    %89 = vector.broadcast %cst_51 : f32 to vector<8x8xf32>
    %90 = arith.mulf %88, %89 : vector<8x8xf32>
    %cst_52 = arith.constant dense<0xFF800000> : vector<8xf32>
    %91 = vector.multi_reduction <maximumf>, %90, %cst_52 [1] : vector<8x8xf32> to vector<8xf32>
    %92 = vector.shape_cast %91 : vector<8xf32> to vector<8x1xf32>
    %93 = vector.broadcast %92 : vector<8x1xf32> to vector<8x8xf32>
    %94 = arith.subf %90, %93 : vector<8x8xf32>
    %95 = math.exp %94 : vector<8x8xf32>
    %cst_53 = arith.constant dense<0.000000e+00> : vector<8xf32>
    %96 = vector.multi_reduction <add>, %95, %cst_53 [1] : vector<8x8xf32> to vector<8xf32>
    %97 = vector.shape_cast %96 : vector<8xf32> to vector<8x1xf32>
    %98 = vector.broadcast %97 : vector<8x1xf32> to vector<8x8xf32>
    %99 = arith.divf %95, %98 : vector<8x8xf32>
    %cst_54 = arith.constant dense<0.000000e+00> : vector<8x8xf32>
    %100 = tpu.matmul %99, %87, %cst_54 {dimension_numbers = #tpu.dot_dimension_numbers<[1], [0], [0], [1], [0, 0, 1, 1], [], []>} : vector<8x8xf32>, vector<8x8xf32>, vector<8x8xf32> -> vector<8x8xf32>
    %c3 = arith.constant 3 : index
    %c0_55 = arith.constant 0 : index
    %c0_56 = arith.constant 0 : index
    %101 = vector.load %arg7[%c3, %c0_55, %c0_56] : memref<4x8x32xf32, #tpu.memory_space<vmem>>, vector<1x8x32xf32>
    %102 = vector.shape_cast %101 : vector<1x8x32xf32> to vector<8x32xf32>
    %cst_57 = arith.constant dense<0.000000e+00> : vector<8x32xf32>
    %103 = tpu.matmul %100, %102, %cst_57 {dimension_numbers = #tpu.dot_dimension_numbers<[1], [0], [0], [1], [0, 0, 1, 1], [], []>} : vector<8x8xf32>, vector<8x32xf32>, vector<8x32xf32> -> vector<8x32xf32>
    %104 = arith.addf %84, %103 : vector<8x32xf32>
    %c0_58 = arith.constant 0 : index
    %c0_59 = arith.constant 0 : index
    %c0_60 = arith.constant 0 : index
    %105 = vector.load %arg12[%c0_58, %c0_59, %c0_60] : memref<1x8x32xf32, #tpu.memory_space<vmem>>, vector<1x8x32xf32>
    %106 = vector.shape_cast %105 : vector<1x8x32xf32> to vector<8x32xf32>
    %107 = vector.shape_cast %104 : vector<8x32xf32> to vector<1x8x32xf32>
    tpu.vector_store %arg12[%c0_58, %c0_59, %c0_60], %107 {strides = array<i32>} : memref<1x8x32xf32, #tpu.memory_space<vmem>>, vector<1x8x32xf32>,
    return
  }
  func.func @transform_0(%arg0: i32) -> (i32, i32, i32) {
    %c0_i32 = arith.constant 0 : i32
    %c0_i32_0 = arith.constant 0 : i32
    %c0_i32_1 = arith.constant 0 : i32
    return %arg0, %c0_i32, %c0_i32_0 : i32, i32, i32
  }
  func.func @transform_1(%arg0: i32) -> (i32, i32, i32) {
    %c0_i32 = arith.constant 0 : i32
    %c0_i32_0 = arith.constant 0 : i32
    %c0_i32_1 = arith.constant 0 : i32
    return %arg0, %c0_i32, %c0_i32_0 : i32, i32, i32
  }
  func.func @transform_2(%arg0: i32) -> (i32, i32, i32) {
    %c0_i32 = arith.constant 0 : i32
    %c0_i32_0 = arith.constant 0 : i32
    %c0_i32_1 = arith.constant 0 : i32
    return %arg0, %c0_i32, %c0_i32_0 : i32, i32, i32
  }
  func.func @transform_3(%arg0: i32) -> (i32, i32) {
    %c0_i32 = arith.constant 0 : i32
    %c0_i32_0 = arith.constant 0 : i32
    %c0_i32_1 = arith.constant 0 : i32
    return %c0_i32, %c0_i32_0 : i32, i32
  }
  func.func @transform_4(%arg0: i32) -> (i32, i32) {
    %c0_i32 = arith.constant 0 : i32
    %c0_i32_0 = arith.constant 0 : i32
    %c0_i32_1 = arith.constant 0 : i32
    return %c0_i32, %c0_i32_0 : i32, i32
  }
  func.func @transform_5(%arg0: i32) -> (i32, i32) {
    %c0_i32 = arith.constant 0 : i32
    %c0_i32_0 = arith.constant 0 : i32
    %c0_i32_1 = arith.constant 0 : i32
    return %c0_i32, %c0_i32_0 : i32, i32
  }
  func.func @transform_6(%arg0: i32) -> (i32, i32, i32) {
    %c0_i32 = arith.constant 0 : i32
    %c0_i32_0 = arith.constant 0 : i32
    %c0_i32_1 = arith.constant 0 : i32
    %c0_i32_2 = arith.constant 0 : i32
    return %c0_i32, %c0_i32_0, %c0_i32_1 : i32, i32, i32
  }
  func.func @transform_7(%arg0: i32) -> (i32, i32) {
    %c0_i32 = arith.constant 0 : i32
    %c0_i32_0 = arith.constant 0 : i32
    %c0_i32_1 = arith.constant 0 : i32
    return %c0_i32, %c0_i32_0 : i32, i32
  }
  func.func @transform_8(%arg0: i32) -> (i32, i32) {
    %c0_i32 = arith.constant 0 : i32
    %c0_i32_0 = arith.constant 0 : i32
    %c0_i32_1 = arith.constant 0 : i32
    return %c0_i32, %c0_i32_0 : i32, i32
  }
  func.func @transform_9(%arg0: i32) -> (i32, i32) {
    %c0_i32 = arith.constant 0 : i32
    %c0_i32_0 = arith.constant 0 : i32
    %c0_i32_1 = arith.constant 0 : i32
    return %c0_i32, %c0_i32_0 : i32, i32
  }
  func.func @transform_10(%arg0: i32) -> (i32, i32) {
    %c0_i32 = arith.constant 0 : i32
    %c0_i32_0 = arith.constant 0 : i32
    %c0_i32_1 = arith.constant 0 : i32
    return %c0_i32, %c0_i32_0 : i32, i32
  }
  func.func @transform_11(%arg0: i32) -> (i32, i32, i32) {
    %c0_i32 = arith.constant 0 : i32
    %c0_i32_0 = arith.constant 0 : i32
    %c0_i32_1 = arith.constant 0 : i32
    return %arg0, %c0_i32, %c0_i32_0 : i32, i32, i32
  }
}

</mosaic_0001>

<bundles_post_ra>
// kernel: multi_head_attention_simple.1
= control target key start
LH: loop header
LB: loop body
LE: loop exit
PB: predicated region body
PF: predicated region fallthrough
CT: control target
= control target key end

     0   :  { %s2399_s0 = inlined_call_operand.vmem [shape: f32[2,8,32], index: 0, kind: input, shape index: {}]   ;;  %s2400_s1 = inlined_call_operand.vmem [shape: f32[2,8,32], index: 1, kind: input, shape index: {}]   ;;  %s2401_s2 = inlined_call_operand.vmem [shape: f32[2,8,32], index: 2, kind: input, shape index: {}]   ;;  %s2402_s3 = inlined_call_operand.vmem [shape: f32[32,32], index: 3, kind: input, shape index: {}]   ;;  %s2403_s4 = inlined_call_operand.vmem [shape: f32[32,32], index: 4, kind: input, shape index: {}]   ;;  %s2404_s5 = inlined_call_operand.vmem [shape: f32[32,32], index: 5, kind: input, shape index: {}]   ;;  %s2405_s6 = inlined_call_operand.vmem [shape: f32[4,8,32], index: 6, kind: input, shape index: {}]   ;;  %s2406_s7 = inlined_call_operand.vmem [shape: f32[1,32], index: 7, kind: input, shape index: {}]   ;;  %s2407_s8 = inlined_call_operand.vmem [shape: f32[1,32], index: 8, kind: input, shape index: {}]   ;;  %s2408_s9 = inlined_call_operand.vmem [shape: f32[1,32], index: 9, kind: input, shape index: {}]   ;;  %s2409_s10 = inlined_call_operand.vmem [shape: f32[1,32], index: 10, kind: input, shape index: {}]   ;;  %s2410_s11 = inlined_call_operand.hbm [shape: f32[2,8,32], index: 11, kind: output, shape index: {}]  }
   0x1   :  { %2414 = sst [smem:[#allocation5_spill]] %s2399_s0 }
   0x2   :  { %16 = vsyncpa [#allocation3], 0 }
   0x3   :  { %18 = vsyncpa [#allocation3 + $0x1], 0  ;;  %s2128_s17 = smov 0   ;;  %s2130_s18 = smov 0  }
   0x4   :  { %s2132_s19 = smov 0   ;;  %s2134_s20 = smov 0  }
   0x5 LB: > { %s2149_s21 = sadd.s32 4294967295, %s2059_s20   ;;  %s1742_s22 = sadd.s32 4294967294, %s2059_s20   ;;  %s2059_s20 = sphi %s2134_s20, %s2423_s20   ;;  %s2055_s19 = sphi %s2132_s19, %s2422_s19   ;;  %s2051_s18 = sphi %s2130_s18, %s2421_s18   ;;  %s2047_s17 = sphi %s2128_s17, %s2420_s17  }
   0x6   : > { %s2153_s23 = sadd.s32 1, %s2059_s20   ;;  %s277_s24 = sadd.s32 1, %s2055_s19 }
   0x7   : > { %s274_s25 = ssub.s32 %s2059_s20, %s2153_s23  ;;  %p287_p0 = scmp.ne.s32.totalorder %s2055_s19, %s2051_s18 }
   0x8   : > { %p275_p1 = scmp.eq.s32.totalorder %s274_s25, 0  ;;  %p288_p2 = scmp.eq.s32.totalorder %s2149_s21, 1 }
   0x9   : > { %p293_p3 = scmp.ne.s32.totalorder %s2051_s18, %s2047_s17  ;;  %p294_p4 = scmp.eq.s32.totalorder %s1742_s22, 1 }
   0xa   : > { %s2164_s26 = scalar_select %p275_p1, %s2055_s19, %s277_s24  }
   0xb   : > { %p2166_p5 = por %p288_p2, %p287_p0  ;;  %p2170_p6 = por %p294_p4, %p293_p3 }
   0xc   : > { %p1745_p7 = scmp.ge.s32.totalorder %s2059_s20, 1  ;;  %p357_p8 = scmp.lt.s32.totalorder %s2059_s20, 3 }
   0xe   : > { %p358_p9 = pnand %p1745_p7, %p357_p8 }
   0xf   : > { %v420_v0 = vld [vmem:[%s2403_s4] sm:$0xff] (!%p358_p9)  ;;  %v421_v1 = vld [vmem:[%s2403_s4 + $0x8] sm:$0xff] (!%p358_p9)  ;;  %v2061_v3 = vmov (!%p358_p9), 0.0|0.0   ;;  %v422_v6 = vld [vmem:[%s2403_s4 + $0x10] sm:$0xff] (!%p358_p9)  ;;  %p404_p10 = scmp.lt.s32.totalorder (!%p358_p9), %s2149_s21, 1  ;;  %vm2062_vm0 = vmmov (!%p358_p9), 0  }
  0x10   : > { %361 = sbr.rel (%p358_p9) target bundleno = 2493 (0x9bd), region = 64  ;;  %v416_v2 = vld [vmem:[%s2402_s3] sm:$0xff] (!%p358_p9)  ;;  %1918 = vmatprep.subr.bf16.mxu1 (!%p358_p9), %v2061_v3  ;;  %v1919_v4 = vpack.c.bf16 (!%p358_p9), %v421_v1, %v420_v0  ;;  %1912 = vmatprep.subr.bf16.mxu0 (!%p358_p9), %v2061_v3  ;;  %v417_v5 = vld [vmem:[%s2402_s3 + $0x8] sm:$0xff] (!%p358_p9)  ;;  %v423_v7 = vld [vmem:[%s2403_s4 + $0x18] sm:$0xff] (!%p358_p9)  ;;  %v2063_v9 = vmov (!%p358_p9), 0.0   ;;  %s2417_s0 = sld [smem:[#allocation5_spill]] (!%p358_p9) }
  0x11   : > { %v1913_v8 = vpack.c.bf16 (!%p358_p9), %v417_v5, %v416_v2  ;;  %1838 = vmatprep.mubr.msk.f32.mxu1 (!%p358_p9), %vm2062_vm0, %v2063_v9  ;;  %v418_v10 = vld [vmem:[%s2402_s3 + $0x10] sm:$0xff] (!%p358_p9)  ;;  %v419_v11 = vld [vmem:[%s2402_s3 + $0x18] sm:$0xff] (!%p358_p9)  ;;  %1827 = vmatprep.mubr.msk.f32.mxu0 (!%p358_p9), %vm2062_vm0, %v2063_v9  ;;  %v1922_v12 = vpack.c.bf16 (!%p358_p9), %v423_v7, %v422_v6  ;;  %vm441_vm1 = vcmask (!%p358_p9), 261120   ;;  %v1752_v16 = vld [vmem:[%s2407_s8] ss:$0 sm:$0xff] (!%p358_p9)  ;;  %vm680_vm2 = vcmask (!%p358_p9), 64512  }
  0x12   : > { %1920 = vmatpush3.bf16.msra.mxu1 (!%p358_p9), %v1919_v4  ;;  %v1916_v13 = vpack.c.bf16 (!%p358_p9), %v419_v11, %v418_v10  ;;  %v1750_v17 = vld [vmem:[%s2406_s7] ss:$0 sm:$0xff] (!%p358_p9)  ;;  %s2411_s25 = smov (!%p358_p9), 120   ;;  %v425_v25 = vld [vmem:[%s2404_s5 + $0x8] sm:$0xff] (!%p358_p9)  ;;  %v426_v26 = vld [vmem:[%s2404_s5 + $0x10] sm:$0xff] (!%p358_p9)  ;;  %s2419_s14 = smov (!%p358_p9), 120  }
  0x13   : > { %1914 = vmatpush3.bf16.msra.mxu0 (!%p358_p9), %v1913_v8  ;;  %1921 = vmatprep.subr.bf16.mxu1 (!%p358_p9), %v2061_v3  ;;  %v424_v24 = vld [vmem:[%s2404_s5] sm:$0xff] (!%p358_p9)  ;;  %v427_v28 = vld [vmem:[%s2404_s5 + $0x18] sm:$0xff] (!%p358_p9) }
  0x14   : > { %1915 = vmatprep.subr.bf16.mxu0 (!%p358_p9), %v2061_v3  ;;  %v1925_v27 = vpack.c.bf16 (!%p358_p9), %v425_v25, %v424_v24  ;;  %v1928_v29 = vpack.c.bf16 (!%p358_p9), %v427_v28, %v426_v26  ;;  %v1754_v41 = vld [vmem:[%s2408_s9] ss:$0 sm:$0xff] (!%p358_p9)  ;;  %v1769_v28 = vld [vmem:[%s2405_s6 + $0x10] sm:$0xff] (!%p358_p9) }
  0x15   : > { %v842_v47 = vld [vmem:[%s2405_s6] sm:$0xff] (!%p358_p9) }
  0x16   : > { %1923 = vmatpush3.bf16.msra.mxu1 (!%p358_p9), %v1922_v12 }
  0x17   : > { %s405_s16 = scalar_select %p404_p10, %s2149_s21, 1  ;;  %1917 = vmatpush3.bf16.msra.mxu0 %v1916_v13  ;;  %1852 = vmatprep.subr.mxu1 %v2063_v9 }
  0x18   : > { %1924 = vmatprep.subr.bf16.mxu0 %v2061_v3 }
  0x19   : > { %s2206_s22 = sshll.u32 %s405_s16, 3 }
  0x1a   : > { %s411_s29 = scalar_lea.vmem %s2400_s1, %s2206_s22  ;;  %s407_s13 = scalar_lea.vmem %s2417_s0, %s2206_s22 }
  0x1b   : > { %v433_v14 = vld [vmem:[%s411_s29] sm:$0xff]  ;;  %s2412_s29 = smov 112   ;;  %s415_s30 = scalar_lea.vmem %s2401_s2, %s2206_s22 }
  0x1c   : > { %v432_v15 = vld [vmem:[%s407_s13] sm:$0xff]  ;;  %1839 = vmatmul.mubr.msk.f32.vlgmr.msra.gmra.mrb[0].mxu1 %vm441_vm1, %v433_v14  ;;  %s2418_s0 = smov 112   ;;  %s2066_s13 = smov 104  }
  0x1d   : > { %1828 = vmatmul.mubr.msk.f32.vlgmr.msra.gmra.mrb[0].mxu0 %vm441_vm1, %v432_v15  ;;  %1854 = vmatprep.mubr.msk.f32.mxu1 %vm2062_vm0, %v2063_v9  ;;  %v434_v30 = vld [vmem:[%s415_s30] sm:$0xff] }
  0x1e   : > { %1849 = vmatprep.mubr.msk.f32.mxu0 %vm2062_vm0, %v2063_v9  ;;  %1926 = vmatpush3.bf16.msra.mxu0 %v1925_v27 }
  0x1f   : > { %1927 = vmatprep.subr.bf16.mxu0 %v2061_v3 }
  0x22   : > { %1929 = vmatpush3.bf16.msra.mxu0 %v1928_v29 }
  0x23   : > { %1872 = vmatprep.subr.mxu0 %v2063_v9 }
  0x25   : > { %1850 = vmatmul.mubr.msk.f32.vlgmr.msra.gmra.mrb[2].mxu0 %vm441_vm1, %v434_v30 }
  0x26   : > { %1874 = vmatprep.mubr.msk.f32.mxu0 %vm2062_vm0, %v2063_v9 }
  0xef   : > { %v590_v18 = vpop.f32.mrb[0].mxu1 }
  0xf0   : > { %v2229_v19 = vadd.f32 %v1752_v16, %v590_v18  ;;  %v1840_v20 = vpop.f32.mrb[1].mxu1  ;;  %v511_v21 = vpop.f32.mrb[0].mxu0 }
  0xf1   : > { %v2231_v22 = vadd.f32 %v1750_v17, %v511_v21  ;;  %v1829_v23 = vpop.f32.mrb[1].mxu0  ;;  %v1764_v21 = vld [vmem:[%s2405_s6 + $0x8] sm:$0xff] }
  0xf2   : > { %919 = vrot.lane.b32.xlu1 %v2229_v19, %s2411_s25  ;;  %1853 = vmatpush3.xpose.msk.msra.mxu1 %vm680_vm2, %v2229_v19 }
  0xf3   : > { %1857 = vmatprep.subr.mxu1 %v2063_v9 }
  0xf5   : > { %1855 = vmatmul.mubr.msk.f32.vlgmr.msra.gmra.mrb[2].mxu1 %vm680_vm2, %v2231_v22 }
  0xf6   : > { %917 = vrot.lane.b32.xlu1 %v2231_v22, %s2411_s25  ;;  %1859 = vmatprep.mubr.msk.f32.mxu1 %vm2062_vm0, %v2063_v9  ;;  %s401_s25 = sand.u32 1, %s2051_s18  }
  0xf8   : > { %v669_v40 = vpop.f32.mrb[2].mxu0 }
  0xf9   : > { %v1851_v42 = vpop.f32.mrb[3].mxu0  ;;  %v2273_v43 = vadd.f32 %v1754_v41, %v669_v40  ;;  %v1774_v40 = vld [vmem:[%s2405_s6 + $0x18] sm:$0xff] }
  0xfa   : > { %1160 = vrot.lane.b32.xlu1 %v2231_v22, %s2412_s29  ;;  %s1746_s29 = sshll.u32 %s401_s25, 3 }
  0xfb   : > { %1858 = vmatpush3.msra.mxu1 %v2273_v43  ;;  %s403_s15 = scalar_lea.vmem [#allocation2], %s1746_s29  ;;  %s2067_s29 = smov [#allocation2]  }
  0xfc   : > { %1862 = vmatprep.subr.mxu1 %v2063_v9  ;;  %s1659_s16 = sshll.u32 %s403_s15, 4  ;;  %s2001_s12 = sshll.u32 %s2067_s29, 4  ;;  %s2358_s16 = int_to_ptr.vmem [resolvable:$true] %s1659_s16  ;;  %s2002_s12 = int_to_ptr.vmem [resolvable:$false] %s2001_s12 }
  0xfd   : > { %s1997_s22 = scalar_lea.vmem %s2358_s16, 128  ;;  %p2004_p0 = scmp.lt.s32.totalorder %s2358_s16, %s2002_s12 }
  0xfe   : > { %p1998_p11 = scmp.ne.s32.totalorder %s2358_s16, %s1997_s22 }
 0x100   : > { %p1999_p12 = pnand %p1998_p11, %p2166_p5 }
 0x102   : > { %p2000_p13 = pneg %p1999_p12 }
 0x164   : > { %v920_v48 = vpop.permute.xlu1 %919 }
 0x168   : > { %v918_v51 = vpop.permute.xlu1 %917 }
 0x16c   : > { %v1161_v53 = vpop.permute.xlu1 %1160 }
 0x1c8   : > { %v753_v31 = vpop.f32.mrb[2].mxu1 }
 0x1c9   : > { %v757_v32 = vmul.f32 0.35355338, %v753_v31  ;;  %v1856_v33 = vpop.f32.mrb[3].mxu1 }
 0x1cb   : > { %v758_v34 = vsel %vm680_vm2, %v757_v32, -inf }
 0x1cc   : > { %759 = vmax.xlane.f32.xlu0 %v758_v34 }
 0x259   : > { %v760_v35 = vpop.xlane.xlu0 %759 }
 0x25a   : > { %v761_v36 = vsub.f32 %v757_v32, %v760_v35 }
 0x25c   : > { %v762_v37 = vmul.f32 1.442695, %v761_v36 }
 0x25e   : > { %1981 = vpow2.f32 %v762_v37 }
 0x268   : > { %v1982_v38 = vpop.eup %1981 }
 0x269   : > { %v764_v39 = vsel %vm680_vm2, %v1982_v38, 0.0 }
 0x26a   : > { %765 = vadd.xlane.f32.xlu0 %v764_v39 }
 0x280   : > { %1162 = vrot.lane.b32.xlu0 %v2229_v19, %s2418_s0 }
 0x2f7   : > { %v766_v44 = vpop.xlane.xlu0 %765 }
 0x2f8   : > { %1983 = vrcp.f32 %v766_v44 }
 0x2fb   : > { %v1163_v52 = vpop.permute.xlu0 %1162 }
 0x302   : > { %v1984_v45 = vpop.eup %1983 }
 0x303   : > { %v768_v46 = vmul.f32 %v1984_v45, %v1982_v38 }
 0x305   : > { %1860 = vmatmul.mubr.msk.f32.vlgmr.msra.gmra.mrb[4].mxu1 %vm680_vm2, %v768_v46 }
 0x306   : > { %1863 = vmatpush3.msra.mxu1 %v842_v47  ;;  %1864 = vmatprep.mubr.msk.f32.mxu1 %vm2062_vm0, %v2063_v9 }
 0x307   : > { %1867 = vmatprep.subr.mxu1 %v2063_v9 }
 0x3d8   : > { %v838_v49 = vpop.f32.mrb[4].mxu1 }
 0x3d9   : > { %v1861_v50 = vpop.f32.mrb[5].mxu1  ;;  %1865 = vmatmul.mubr.msk.f32.vlgmr.msra.gmra.mrb[6].mxu1 %vm680_vm2, %v838_v49 }
 0x3da   : > { %1868 = vmatpush3.xpose.msk.msra.mxu1 %vm680_vm2, %v920_v48  ;;  %1869 = vmatprep.mubr.msk.f32.mxu1 %vm2062_vm0, %v2063_v9 }
 0x3db   : > { %1882 = vmatprep.subr.mxu1 %v2063_v9 }
 0x3dd   : > { %1870 = vmatmul.mubr.msk.f32.vlgmr.msra.gmra.mrb[8].mxu1 %vm680_vm2, %v918_v51 }
 0x3de   : > { %1883 = vmatpush3.xpose.msk.msra.mxu1 %vm680_vm2, %v1163_v52  ;;  %1884 = vmatprep.mubr.msk.f32.mxu1 %vm2062_vm0, %v2063_v9 }
 0x3df   : > { %1887 = vmatprep.subr.mxu1 %v2063_v9 }
 0x3e1   : > { %1885 = vmatmul.mubr.msk.f32.vlgmr.msra.gmra.mrb[10].mxu1 %vm680_vm2, %v1161_v53 }
 0x3e2   : > { %1889 = vmatprep.mubr.msk.f32.mxu1 %vm2062_vm0, %v2063_v9 }
 0x4ac   : > { %v2297_v54 = vpop.f32.mrb[6].mxu1 }
 0x4ad   : > { %v1866_v55 = vpop.f32.mrb[7].mxu1 }
 0x4b0   : > { %v991_v56 = vpop.f32.mrb[8].mxu1 }
 0x4b1   : > { %v1871_v57 = vpop.f32.mrb[9].mxu1  ;;  %v995_v62 = vmul.f32 0.35355338, %v991_v56 }
 0x4b3   : > { %v996_v63 = vsel %vm680_vm2, %v995_v62, -inf }
 0x4b4   : > { %v1234_v58 = vpop.f32.mrb[10].mxu1 }
 0x4b5   : > { %v1238_v59 = vmul.f32 0.35355338, %v1234_v58  ;;  %v1886_v60 = vpop.f32.mrb[11].mxu1 }
 0x4b7   : > { %v1239_v61 = vsel %vm680_vm2, %v1238_v59, -inf }
 0x4b8   : > { %1240 = vmax.xlane.f32.xlu1 %v1239_v61 }
 0x4c9   : > { %1250 = vrot.lane.b32.xlu1 %v2273_v43, %s2418_s0 }
 0x4cd   : > { %1402 = vrot.lane.b32.xlu1 %v2231_v22, %s2066_s13 }
 0x4f1   : > { %997 = vmax.xlane.f32.xlu1 %v996_v63 }
 0x502   : > { %1008 = vrot.lane.b32.xlu1 %v2273_v43, %s2419_s14  ;;  %s1777_s14 = sshll.u32 %s2149_s21, 7  ;;  %s1646_s21 = scalar_lea.sflag [#allocation3], %s401_s25 }
 0x503   : > { %s2356_s0 = scalar_lea.hbm %s2410_s11, %s1777_s14 }
 0x545   : > { %v1241_v0 = vpop.xlane.xlu1 %1240 }
 0x546   : > { %v1242_v1 = vsub.f32 %v1238_v59, %v1241_v0 }
 0x548   : > { %v1243_v2 = vmul.f32 1.442695, %v1242_v1 }
 0x549   : > { %v1251_v3 = vpop.permute.xlu1 %1250 }
 0x54a   : > { %1985 = vpow2.f32 %v1243_v2  ;;  %1888 = vmatpush3.msra.mxu1 %v1251_v3 }
 0x54b   : > { %1897 = vmatprep.subr.mxu1 %v2063_v9 }
 0x54d   : > { %v1403_v6 = vpop.permute.xlu1 %1402 }
 0x554   : > { %v1986_v4 = vpop.eup %1985 }
 0x555   : > { %v1245_v5 = vsel %vm680_vm2, %v1986_v4, 0.0 }
 0x556   : > { %1246 = vadd.xlane.f32.xlu0 %v1245_v5 }
 0x56c   : > { %1404 = vrot.lane.b32.xlu0 %v2229_v19, %s2066_s13 }
 0x57e   : > { %v998_v7 = vpop.xlane.xlu1 %997 }
 0x57f   : > { %v999_v8 = vsub.f32 %v995_v62, %v998_v7 }
 0x581   : > { %v1000_v10 = vmul.f32 1.442695, %v999_v8 }
 0x582   : > { %v1009_v11 = vpop.permute.xlu1 %1008 }
 0x583   : > { %1987 = vpow2.f32 %v1000_v10  ;;  %1873 = vmatpush3.msra.mxu0 %v1009_v11 }
 0x584   : > { %1877 = vmatprep.subr.mxu0 %v2063_v9 }
 0x58d   : > { %v1988_v12 = vpop.eup %1987 }
 0x58e   : > { %v1002_v13 = vsel %vm680_vm2, %v1988_v12, 0.0 }
 0x58f   : > { %1003 = vadd.xlane.f32.xlu0 %v1002_v13 }
 0x5e3   : > { %v1247_v14 = vpop.xlane.xlu0 %1246 }
 0x5e4   : > { %1989 = vrcp.f32 %v1247_v14 }
 0x5e7   : > { %v1405_v17 = vpop.permute.xlu0 %1404 }
 0x5ee   : > { %v1990_v15 = vpop.eup %1989 }
 0x5ef   : > { %v1249_v16 = vmul.f32 %v1990_v15, %v1986_v4 }
 0x5f1   : > { %1890 = vmatmul.mubr.msk.f32.vlgmr.msra.gmra.mrb[12].mxu1 %vm680_vm2, %v1249_v16 }
 0x5f2   : > { %1898 = vmatpush3.xpose.msk.msra.mxu1 %vm680_vm2, %v1405_v17  ;;  %1899 = vmatprep.mubr.msk.f32.mxu1 %vm2062_vm0, %v2063_v9 }
 0x5f5   : > { %1900 = vmatmul.mubr.msk.f32.vlgmr.msra.gmra.mrb[14].mxu1 %vm680_vm2, %v1403_v6 }
 0x61c   : > { %v1004_v18 = vpop.xlane.xlu0 %1003 }
 0x61d   : > { %1991 = vrcp.f32 %v1004_v18 }
 0x627   : > { %v1992_v19 = vpop.eup %1991 }
 0x628   : > { %v1006_v20 = vmul.f32 %v1992_v19, %v1988_v12 }
 0x62a   : > { %1875 = vmatmul.mubr.msk.f32.vlgmr.msra.gmra.mrb[4].mxu0 %vm680_vm2, %v1006_v20 }
 0x62b   : > { %1879 = vmatprep.mubr.msk.f32.mxu0 %vm2062_vm0, %v2063_v9  ;;  %1878 = vmatpush3.msra.mxu0 %v1764_v21 }
 0x62c   : > { %1892 = vmatprep.subr.mxu0 %v2063_v9 }
 0x6c4   : > { %v1322_v22 = vpop.f32.mrb[12].mxu1 }
 0x6c5   : > { %v1891_v23 = vpop.f32.mrb[13].mxu1 }
 0x6c8   : > { %v1476_v24 = vpop.f32.mrb[14].mxu1 }
 0x6c9   : > { %v1480_v25 = vmul.f32 0.35355338, %v1476_v24  ;;  %v1901_v26 = vpop.f32.mrb[15].mxu1 }
 0x6cb   : > { %v1481_v27 = vsel %vm680_vm2, %v1480_v25, -inf }
 0x6cc   : > { %1482 = vmax.xlane.f32.xlu0 %v1481_v27 }
 0x6fd   : > { %v1080_v29 = vpop.f32.mrb[4].mxu0 }
 0x6fe   : > { %v1876_v30 = vpop.f32.mrb[5].mxu0  ;;  %1880 = vmatmul.mubr.msk.f32.vlgmr.msra.gmra.mrb[6].mxu0 %vm680_vm2, %v1080_v29 }
 0x6ff   : > { %1893 = vmatpush3.msra.mxu0 %v1769_v28  ;;  %1894 = vmatprep.mubr.msk.f32.mxu0 %vm2062_vm0, %v2063_v9 }
 0x700   : > { %1902 = vmatprep.subr.mxu0 %v2063_v9 }
 0x706   : > { %1895 = vmatmul.mubr.msk.f32.vlgmr.msra.gmra.mrb[6].mxu0 %vm680_vm2, %v1322_v22 }
 0x707   : > { %1904 = vmatprep.mubr.msk.f32.mxu0 %vm2062_vm0, %v2063_v9 }
 0x759   : > { %v1483_v31 = vpop.xlane.xlu0 %1482 }
 0x75a   : > { %v1484_v32 = vsub.f32 %v1480_v25, %v1483_v31 }
 0x75c   : > { %v1485_v33 = vmul.f32 1.442695, %v1484_v32 }
 0x75e   : > { %1993 = vpow2.f32 %v1485_v33 }
 0x768   : > { %v1994_v34 = vpop.eup %1993 }
 0x769   : > { %v1487_v35 = vsel %vm680_vm2, %v1994_v34, 0.0 }
 0x76a   : > { %1488 = vadd.xlane.f32.xlu0 %v1487_v35 }
 0x780   : > { %1492 = vrot.lane.b32.xlu0 %v2273_v43, %s2066_s13  ;;  %v1756_v43 = vld [vmem:[%s2409_s10] ss:$0 sm:$0xff]  ;;  %s2003_s13 = scalar_lea.vmem %s2002_s12, 256 }
 0x781   : > { %v916_v44 = vadd.f32 %v1756_v43, %v2297_v54  ;;  %p2005_p1 = scmp.lt.s32.totalorder %s2003_s13, %s1997_s22 }
 0x783   : > { %p2006_p2 = por %p2005_p1, %p2004_p0 }
 0x785   : > { %p2007_p3 = pnand %p2006_p2, %p2000_p13 }
 0x7f7   : > { %v1489_v36 = vpop.xlane.xlu0 %1488 }
 0x7f8   : > { %1995 = vrcp.f32 %v1489_v36 }
 0x7fb   : > { %v1493_v37 = vpop.permute.xlu0 %1492 }
 0x7fc   : > { %1903 = vmatpush3.msra.mxu0 %v1493_v37 }
 0x7fd   : > { %1907 = vmatprep.subr.mxu0 %v2063_v9 }
 0x802   : > { %v1996_v38 = vpop.eup %1995 }
 0x803   : > { %v1491_v39 = vmul.f32 %v1996_v38, %v1994_v34 }
 0x805   : > { %1905 = vmatmul.mubr.msk.f32.vlgmr.msra.gmra.mrb[8].mxu0 %vm680_vm2, %v1491_v39 }
 0x806   : > { %1908 = vmatpush3.msra.mxu0 %v1774_v40  ;;  %1909 = vmatprep.mubr.msk.f32.mxu0 %vm2062_vm0, %v2063_v9 }
 0x8d8   : > { %v1564_v41 = vpop.f32.mrb[8].mxu0 }
 0x8d9   : > { %v1906_v42 = vpop.f32.mrb[9].mxu0  ;;  %1910 = vmatmul.mubr.msk.f32.vlgmr.msra.gmra.mrb[6].mxu0 %vm680_vm2, %v1564_v41 }
 0x9ac   : > { %v1639_v45 = vpop.f32.mrb[6].mxu0 }
 0x9ad   : > { %v1931_v46 = vadd.f32 %v1639_v45, %v916_v44  ;;  %v1911_v47 = vpop.f32.mrb[7].mxu0 }
 0x9af   : > { %1644 = vst.msk [vmem:[%s403_s15] sm:$0xff] %vm441_vm1, %v1931_v46 }
 0x9b0   : > { %2010 = shalt.err (!%p2007_p3)
}
 0x9b1   : > { %s2011_s25 = scalar_lea.hbm %s2356_s0, 128  ;;  %s2015_s24 = scalar_lea.hbm %s2410_s11, 256 }
 0x9b2   : > { %p2012_p4 = scmp.ne.s32.totalorder %s2356_s0, %s2011_s25  ;;  %p2016_p9 = scmp.lt.u32.totalorder %s2356_s0, %s2410_s11 }
 0x9b3   : > { %p2017_p10 = scmp.lt.u32.totalorder %s2015_s24, %s2011_s25  ;;  %p2019_p12 = scmp.lt.u32.totalorder %s2011_s25, %s2356_s0 }
 0x9b4   : > { %p2013_p7 = pnand %p2012_p4, %p2166_p5 }
 0x9b5   : > { %p2018_p11 = por %p2017_p10, %p2016_p9 }
 0x9b6   : > { %p2014_p8 = pneg %p2013_p7 }
 0x9b7   : > { %p2020_p13 = por %p2019_p12, %p2018_p11 }
 0x9b9   : > { %p2021_p0 = pnand %p2020_p13, %p2014_p8 }
 0x9bb   : > { %2024 = shalt.err (!%p2021_p0)
}
 0x9bc   : > { %1936 = dma.vmem_to_hbm [thread:$0]  (%p2166_p5), %s2358_s16, 128, %s2356_s0, %s1646_s21  }
 0x9bd PF: > { %p1942_p1 = scmp.ge.s32.totalorder %s2059_s20, 2  ;;  %s1671_s22 = sand.u32 1, %s2047_s17  }
 0x9be   : > { %s1672_s12 = scalar_lea.sflag [#allocation3], %s1671_s22 }
 0x9bf   : > { %p1939_p2 = pnand %p1942_p1, %p2170_p6 }
 0x9c1   : > { %2042 = dma.done.wait (!%p1939_p2), %s1672_s12, 128  }
 0x9c2   : > { %2044 = vsyncadd (!%p1939_p2), %s1672_s12, 4294967168  ;;  %p21_p3 = scmp.ge.s32.totalorder %s2153_s23, 4   ;;  %s2420_s17 = smov %s2051_s18 }
 0x9c3   : > { %s2421_s18 = smov %s2055_s19  ;;  %s2422_s19 = smov %s2164_s26 }
 0x9c4   : > { %s2423_s20 = smov %s2153_s23  ;;  %23 = sbr.rel (!%p21_p3) target bundleno = 5 (0x5), region = 108 }
 0x9cb   :  { %1677 = vsyncpa [#allocation3], 1 }
 0x9cc   :  { %1679 = vsyncpa [#allocation3 + $0x1], 1 }

</bundles_post_ra>
